<compile_context>
chip_gen: v6e
topology: v6e:2x2x1
jax: 0.10.0
libtpu: 0.0.40
codegen_flags: <defaults>
</compile_context>

<pallas_src>
import functools

import jax
import jax.numpy as jnp
from jax.experimental import pallas as pl
from jax.experimental.pallas import tpu as pltpu

LANE = 128       # TPU lane width (last-dim tiling unit)
SUBLANE = 8      # TPU sublane width (second-to-last-dim tiling unit)


def _round_up(v: int, m: int) -> int:
    return (v + m - 1) // m * m


def mlp_block_kernel(x_ref, w1_ref, b1_ref, alpha_ref, w2_ref, b2_ref, o_ref):
    # Feed the MXU in the weight storage dtype (bf16 fast path when the model
    # is bf16; exact no-op for f32), accumulate in f32.
    x = x_ref[...].astype(w1_ref.dtype)                          # [TM, Cin]

    # First linear: x @ w1 + b1.
    h = jnp.dot(x, w1_ref[...], preferred_element_type=jnp.float32)
    h = h + b1_ref[...].astype(jnp.float32)                      # [1, Chid_p] broadcast

    # PReLU with a single learnable scalar (PyTorch default num_parameters=1),
    # alpha read from SMEM on the scalar path.
    alpha = alpha_ref[0].astype(jnp.float32)
    h = jnp.where(h > 0, h, alpha * h)

    # Second linear: h @ w2 + b2.
    h = h.astype(w2_ref.dtype)
    y = jnp.dot(h, w2_ref[...], preferred_element_type=jnp.float32)
    y = y + b2_ref[...].astype(jnp.float32)                      # [1, Cout] broadcast

    o_ref[...] = y.astype(o_ref.dtype)


@functools.partial(jax.jit, static_argnames=("tm",))
def mlp_block(x, w1, b1, alpha, w2, b2, *, tm=1024):
    """x: [N, Cin]; w1: [Cin, Chid]; b1: [1, Chid]; alpha: [1];
    w2: [Chid, Cout]; b2: [1, Cout]  ->  [N, Cout].

    Computes prelu(x @ w1 + b1) @ w2 + b2 (same math as the PyTorch module;
    weights stored transposed relative to torch.nn.Linear)."""
    n, cin = x.shape
    chid = w1.shape[1]
    cout = w2.shape[1]

    # Pad only the hidden dim (small weight/bias arrays, DMA'd once) to keep
    # the intermediate and the MXU N-dim lane-dense.  x / out are untouched.
    chid_p = _round_up(chid, LANE)
    if chid_p != chid:
        w1 = jnp.pad(w1, ((0, 0), (0, chid_p - chid)))
        b1 = jnp.pad(b1, ((0, 0), (0, chid_p - chid)))
        w2 = jnp.pad(w2, ((0, chid_p - chid), (0, 0)))

    # Batch tile: multiple of 8 sublanes; cap at ceil(n/2) so the batch grid
    # has >=2 steps whenever possible (v7x megacore + pipeline overlap).
    tm = max(SUBLANE, min(tm, _round_up(pl.cdiv(n, 2), SUBLANE)))
    grid = (pl.cdiv(n, tm),)

    in_b = x.dtype.itemsize
    w_b = w1.dtype.itemsize
    out_b = x.dtype.itemsize

    # Explicit VMEM budget: double-buffered x/out tiles, single-buffered
    # resident weights/biases, f32 intermediate, plus headroom.
    xo_bytes = 2 * tm * cin * in_b + 2 * tm * cout * out_b
    w_bytes = (cin * chid_p + chid_p * cout + chid_p + cout) * w_b
    inter_bytes = tm * chid_p * 4
    vmem_limit = int(min(2 * (xo_bytes + w_bytes + inter_bytes) + (4 << 20),
                         128 << 20))

    cost = pl.CostEstimate(
        flops=2 * n * (cin * chid + chid * cout),
        bytes_accessed=n * (cin * in_b + cout * out_b) + w_bytes,
        transcendentals=0,
    )

    out = pl.pallas_call(
        mlp_block_kernel,
        out_shape=jax.ShapeDtypeStruct((n, cout), x.dtype),
        grid=grid,
        in_specs=[
            # x: tiled along batch; pipelined (double-buffered) by Pallas.
            pl.BlockSpec((tm, cin), lambda i: (i, 0)),
            # Weights / biases: constant block index -> fetched exactly once;
            # single buffer since they never re-DMA.
            pl.BlockSpec((cin, chid_p), lambda i: (0, 0),
                         pipeline_mode=pl.Buffered(1)),
            pl.BlockSpec((1, chid_p), lambda i: (0, 0),
                         pipeline_mode=pl.Buffered(1)),
            # PReLU alpha: scalar in SMEM.
            pl.BlockSpec(memory_space=pltpu.MemorySpace.SMEM),
            pl.BlockSpec((chid_p, cout), lambda i: (0, 0),
                         pipeline_mode=pl.Buffered(1)),
            pl.BlockSpec((1, cout), lambda i: (0, 0),
                         pipeline_mode=pl.Buffered(1)),
        ],
        out_specs=pl.BlockSpec((tm, cout), lambda i: (i, 0)),
        compiler_params=pltpu.CompilerParams(
            dimension_semantics=("parallel",),   # megacore sharding on v7x
            vmem_limit_bytes=vmem_limit,
        ),
        cost_estimate=cost,
    )(x, w1, b1, alpha, w2, b2)

    return out


def init_params(key, in_channels, hidden_channels, out_channels, dtype=jnp.float32):
    k1, k2, k3, k4 = jax.random.split(key, 4)
    # Deterministic synthetic init (uniform, roughly PyTorch-Linear-like scale).
    s1 = 1.0 / jnp.sqrt(in_channels)
    s2 = 1.0 / jnp.sqrt(hidden_channels)
    w1 = jax.random.uniform(k1, (in_channels, hidden_channels), dtype, -s1, s1)
    b1 = jax.random.uniform(k2, (1, hidden_channels), dtype, -s1, s1)
    w2 = jax.random.uniform(k3, (hidden_channels, out_channels), dtype, -s2, s2)
    b2 = jax.random.uniform(k4, (1, out_channels), dtype, -s2, s2)
    alpha = jnp.full((1,), 0.25, dtype)          # PReLU default init = 0.25
    return w1, b1, alpha, w2, b2


if __name__ == "__main__":
    in_channels, hidden_channels, out_channels = 16, 32, 8
    batch = 8

    key = jax.random.PRNGKey(0)
    kx, kp = jax.random.split(key)
    x = jax.random.normal(kx, (batch, in_channels), jnp.float32)
    w1, b1, alpha, w2, b2 = init_params(kp, in_channels, hidden_channels, out_channels)

    out = mlp_block(x, w1, b1, alpha, w2, b2)
    jax.block_until_ready(out)

    # Pure-JAX reference for sanity checking (identical math, f32).
    h_ref = x @ w1 + b1
    h_ref = jnp.where(h_ref > 0, h_ref, alpha[0] * h_ref)
    ref = h_ref @ w2 + b2
    assert out.shape == (batch, out_channels)
    assert jnp.allclose(out, ref, atol=1e-5, rtol=1e-5), (
        float(jnp.max(jnp.abs(out - ref))))

    print("KERNEL_OK")
</pallas_src>

<mosaic_0001>
module attributes {stable_mosaic.version = 11 : i64} {
  func.func @mlp_block_kernel(%arg0: i32, %arg1: memref<8x16xf32, #tpu.memory_space<vmem>>, %arg2: memref<16x128xf32, #tpu.memory_space<vmem>>, %arg3: memref<1x128xf32, #tpu.memory_space<vmem>>, %arg4: memref<1xf32, #tpu.memory_space<smem>>, %arg5: memref<128x8xf32, #tpu.memory_space<vmem>>, %arg6: memref<1x8xf32, #tpu.memory_space<vmem>>, %arg7: memref<8x8xf32, #tpu.memory_space<vmem>>) attributes {dimension_semantics = [#tpu.dimension_semantics<parallel>], iteration_bounds = array<i64: 1>, scalar_prefetch = 0 : i64, scratch_operands = 0 : i64, tpu.core_type = #tpu.core_type<tc>, window_params = [{transform_indices = @transform_0, window_bounds = array<i64: 8, 16>}, {pipeline_mode = #tpu.pipeline_mode<synchronous>, transform_indices = @transform_1, window_bounds = array<i64: 16, 128>}, {pipeline_mode = #tpu.pipeline_mode<synchronous>, transform_indices = @transform_2, window_bounds = array<i64: 1, 128>}, {transform_indices = @transform_3, window_bounds = array<i64: 1>}, {pipeline_mode = #tpu.pipeline_mode<synchronous>, transform_indices = @transform_4, window_bounds = array<i64: 128, 8>}, {pipeline_mode = #tpu.pipeline_mode<synchronous>, transform_indices = @transform_5, window_bounds = array<i64: 1, 8>}, {transform_indices = @transform_6, window_bounds = array<i64: 8, 8>}]} {
    %c0 = arith.constant 0 : index
    %c0_0 = arith.constant 0 : index
    %0 = vector.load %arg1[%c0, %c0_0] : memref<8x16xf32, #tpu.memory_space<vmem>>, vector<8x16xf32>
    %c0_1 = arith.constant 0 : index
    %c0_2 = arith.constant 0 : index
    %1 = vector.load %arg2[%c0_1, %c0_2] : memref<16x128xf32, #tpu.memory_space<vmem>>, vector<16x128xf32>
    %cst = arith.constant dense<0.000000e+00> : vector<8x128xf32>
    %2 = tpu.matmul %0, %1, %cst {dimension_numbers = #tpu.dot_dimension_numbers<[1], [0], [0], [1], [0, 0, 1, 1], [], []>} : vector<8x16xf32>, vector<16x128xf32>, vector<8x128xf32> -> vector<8x128xf32>
    %c0_3 = arith.constant 0 : index
    %c0_4 = arith.constant 0 : index
    %3 = vector.load %arg3[%c0_3, %c0_4] : memref<1x128xf32, #tpu.memory_space<vmem>>, vector<1x128xf32>
    %4 = vector.broadcast %3 : vector<1x128xf32> to vector<8x128xf32>
    %5 = arith.addf %2, %4 : vector<8x128xf32>
    %c0_5 = arith.constant 0 : index
    %6 = memref.load %arg4[%c0_5] : memref<1xf32, #tpu.memory_space<smem>>
    %cst_6 = arith.constant 0.000000e+00 : f32
    %7 = vector.broadcast %cst_6 : f32 to vector<8x128xf32>
    %8 = arith.cmpf ogt, %5, %7 : vector<8x128xf32>
    %9 = vector.broadcast %6 : f32 to vector<8x128xf32>
    %10 = arith.mulf %9, %5 : vector<8x128xf32>
    %11 = arith.select %8, %5, %10 : vector<8x128xi1>, vector<8x128xf32>
    %c0_7 = arith.constant 0 : index
    %c0_8 = arith.constant 0 : index
    %12 = vector.load %arg5[%c0_7, %c0_8] : memref<128x8xf32, #tpu.memory_space<vmem>>, vector<128x8xf32>
    %cst_9 = arith.constant dense<0.000000e+00> : vector<8x8xf32>
    %13 = tpu.matmul %11, %12, %cst_9 {dimension_numbers = #tpu.dot_dimension_numbers<[1], [0], [0], [1], [0, 0, 1, 1], [], []>} : vector<8x128xf32>, vector<128x8xf32>, vector<8x8xf32> -> vector<8x8xf32>
    %c0_10 = arith.constant 0 : index
    %c0_11 = arith.constant 0 : index
    %14 = vector.load %arg6[%c0_10, %c0_11] : memref<1x8xf32, #tpu.memory_space<vmem>>, vector<1x8xf32>
    %15 = vector.broadcast %14 : vector<1x8xf32> to vector<8x8xf32>
    %16 = arith.addf %13, %15 : vector<8x8xf32>
    %c0_12 = arith.constant 0 : index
    %c0_13 = arith.constant 0 : index
    %17 = vector.load %arg7[%c0_12, %c0_13] : memref<8x8xf32, #tpu.memory_space<vmem>>, vector<8x8xf32>
    tpu.vector_store %arg7[%c0_12, %c0_13], %16 {strides = array<i32>} : memref<8x8xf32, #tpu.memory_space<vmem>>, vector<8x8xf32>,
    return
  }
  func.func @transform_0(%arg0: i32) -> (i32, i32) {
    %c0_i32 = arith.constant 0 : i32
    %c0_i32_0 = arith.constant 0 : i32
    return %arg0, %c0_i32 : i32, i32
  }
  func.func @transform_1(%arg0: i32) -> (i32, i32) {
    %c0_i32 = arith.constant 0 : i32
    %c0_i32_0 = arith.constant 0 : i32
    %c0_i32_1 = arith.constant 0 : i32
    return %c0_i32, %c0_i32_0 : i32, i32
  }
  func.func @transform_2(%arg0: i32) -> (i32, i32) {
    %c0_i32 = arith.constant 0 : i32
    %c0_i32_0 = arith.constant 0 : i32
    %c0_i32_1 = arith.constant 0 : i32
    return %c0_i32, %c0_i32_0 : i32, i32
  }
  func.func @transform_3(%arg0: i32) -> i32 {
    %c0_i32 = arith.constant 0 : i32
    %c0_i32_0 = arith.constant 0 : i32
    return %c0_i32 : i32
  }
  func.func @transform_4(%arg0: i32) -> (i32, i32) {
    %c0_i32 = arith.constant 0 : i32
    %c0_i32_0 = arith.constant 0 : i32
    %c0_i32_1 = arith.constant 0 : i32
    return %c0_i32, %c0_i32_0 : i32, i32
  }
  func.func @transform_5(%arg0: i32) -> (i32, i32) {
    %c0_i32 = arith.constant 0 : i32
    %c0_i32_0 = arith.constant 0 : i32
    %c0_i32_1 = arith.constant 0 : i32
    return %c0_i32, %c0_i32_0 : i32, i32
  }
  func.func @transform_6(%arg0: i32) -> (i32, i32) {
    %c0_i32 = arith.constant 0 : i32
    %c0_i32_0 = arith.constant 0 : i32
    return %arg0, %c0_i32 : i32, i32
  }
}

</mosaic_0001>

<bundles_post_ra>
// kernel: mlp_block.1
= control target key start
LH: loop header
LB: loop body
LE: loop exit
PB: predicated region body
PF: predicated region fallthrough
CT: control target
= control target key end

     0   :  { %v313_v1 = vmov 0.0   ;;  %vm314_vm0 = vmmov 0   ;;  %vm35_vm1 = vcmask 130048   ;;  %s422_s0 = inlined_call_operand.vmem [shape: f32[8,16], index: 0, kind: input, shape index: {}]   ;;  %s423_s1 = inlined_call_operand.vmem [shape: f32[16,128], index: 1, kind: input, shape index: {}]   ;;  %s424_s2 = inlined_call_operand.vmem [shape: f32[1,128], index: 2, kind: input, shape index: {}]   ;;  %s425_s3 = inlined_call_operand.<no memory space> [shape: f32[1], index: 3, kind: input, shape index: {}]   ;;  %s426_s4 = inlined_call_operand.vmem [shape: f32[128,8], index: 4, kind: input, shape index: {}]   ;;  %s427_s5 = inlined_call_operand.vmem [shape: f32[1,8], index: 5, kind: input, shape index: {}]   ;;  %s428_s6 = inlined_call_operand.hbm [shape: f32[8,8], index: 6, kind: output, shape index: {}]  }
   0x1   :  { %v27_v0 = vld [vmem:[%s423_s1 + $0x8] sm:$0xff]  ;;  %246 = vmatprep.subr.mxu0 %v313_v1  ;;  %v26_v2 = vld [vmem:[%s423_s1] sm:$0xff]  ;;  %250 = vmatprep.mubr.msk.f32.mxu0 %vm314_vm0, %v313_v1  ;;  %v129_v3 = vld [vmem:[%s426_s4 + $0x78] sm:$0xff] }
   0x2   :  { %247 = vmatpush3.msra.mxu0 %v27_v0  ;;  %v25_v4 = vld [vmem:[%s422_s0] sm:$0xff]  ;;  %253 = vmatprep.subr.mxu1 %v313_v1  ;;  %v128_v5 = vld [vmem:[%s426_s4 + $0x70] sm:$0xff]  ;;  %v127_v6 = vld [vmem:[%s426_s4 + $0x68] sm:$0xff] }
   0x3   :  { %248 = vmatprep.subr.mxu0 %v313_v1  ;;  %254 = vmatpush3.msra.mxu1 %v129_v3 }
   0x4   :  { %249 = vmatpush3.msra.mxu0 %v26_v2  ;;  %255 = vmatprep.subr.mxu1 %v313_v1 }
   0x5   :  { %251 = vmatmul.mubr.msk.f32.vlgmr.msra.gmra.mxu0 %vm35_vm1, %v25_v4  ;;  %256 = vmatpush3.msra.mxu1 %v128_v5 }
   0x6   :  { %12 = vsyncpa [#allocation4], 0  ;;  %257 = vmatprep.subr.mxu1 %v313_v1  ;;  %v126_v7 = vld [vmem:[%s426_s4 + $0x60] sm:$0xff]  ;;  %285 = vmatprep.mubr.msk.f32.mxu1 %vm314_vm0, %v313_v1  ;;  %v125_v8 = vld [vmem:[%s426_s4 + $0x58] sm:$0xff]  ;;  %v111_v22 = vstv %s425_s3  ;;  %vm207_vm3 = vcmask 64512  }
   0x7   :  { %258 = vmatpush3.msra.mxu1 %v127_v6  ;;  %v124_v9 = vld [vmem:[%s426_s4 + $0x50] sm:$0xff]  ;;  %v123_v10 = vld [vmem:[%s426_s4 + $0x48] sm:$0xff]  ;;  %v122_v11 = vld [vmem:[%s426_s4 + $0x40] sm:$0xff] }
   0x8   :  { %259 = vmatprep.subr.mxu1 %v313_v1  ;;  %v121_v12 = vld [vmem:[%s426_s4 + $0x38] sm:$0xff]  ;;  %v120_v13 = vld [vmem:[%s426_s4 + $0x30] sm:$0xff]  ;;  %v119_v14 = vld [vmem:[%s426_s4 + $0x28] sm:$0xff] }
   0x9   :  { %260 = vmatpush3.msra.mxu1 %v126_v7  ;;  %v118_v15 = vld [vmem:[%s426_s4 + $0x20] sm:$0xff]  ;;  %v117_v16 = vld [vmem:[%s426_s4 + $0x18] sm:$0xff]  ;;  %v116_v17 = vld [vmem:[%s426_s4 + $0x10] sm:$0xff] }
   0xa   :  { %261 = vmatprep.subr.mxu1 %v313_v1  ;;  %v115_v18 = vld [vmem:[%s426_s4 + $0x8] sm:$0xff]  ;;  %v114_v19 = vld [vmem:[%s426_s4] sm:$0xff]  ;;  %s315_s4 = smov [#allocation3]  }
   0xb   :  { %262 = vmatpush3.msra.mxu1 %v125_v8  ;;  %v223_v20 = vld [vmem:[%s424_s2] ss:$0 sm:$0xff]  ;;  %s215_s13 = sshll.u32 %s315_s4, 4  ;;  %s216_s13 = int_to_ptr.vmem [resolvable:$true] %s215_s13 }
   0xc   :  { %263 = vmatprep.subr.mxu1 %v313_v1  ;;  %v225_v27 = vld [vmem:[%s427_s5] ss:$0 sm:$0xff]  ;;  %s291_s2 = scalar_lea.vmem %s216_s13, 128  ;;  %p296_p1 = scmp.lt.s32.totalorder %s216_s13, %s216_s13 }
   0xd   :  { %264 = vmatpush3.msra.mxu1 %v124_v9  ;;  %p292_p0 = scmp.ne.s32.totalorder %s216_s13, %s291_s2  ;;  %p297_p2 = scmp.lt.s32.totalorder %s291_s2, %s291_s2 }
   0xe   :  { %265 = vmatprep.subr.mxu1 %v313_v1 }
   0xf   :  { %266 = vmatpush3.msra.mxu1 %v123_v10  ;;  %p298_p3 = por %p297_p2, %p296_p1 }
  0x10   :  { %267 = vmatprep.subr.mxu1 %v313_v1 }
  0x11   :  { %268 = vmatpush3.msra.mxu1 %v122_v11  ;;  %p299_p4 = pnand %p298_p3, %p292_p0 }
  0x12   :  { %269 = vmatprep.subr.mxu1 %v313_v1 }
  0x13   :  { %270 = vmatpush3.msra.mxu1 %v121_v12 }
  0x14   :  { %271 = vmatprep.subr.mxu1 %v313_v1 }
  0x15   :  { %272 = vmatpush3.msra.mxu1 %v120_v13 }
  0x16   :  { %273 = vmatprep.subr.mxu1 %v313_v1 }
  0x17   :  { %274 = vmatpush3.msra.mxu1 %v119_v14 }
  0x18   :  { %275 = vmatprep.subr.mxu1 %v313_v1 }
  0x19   :  { %276 = vmatpush3.msra.mxu1 %v118_v15 }
  0x1a   :  { %277 = vmatprep.subr.mxu1 %v313_v1 }
  0x1b   :  { %278 = vmatpush3.msra.mxu1 %v117_v16 }
  0x1c   :  { %279 = vmatprep.subr.mxu1 %v313_v1 }
  0x1d   :  { %280 = vmatpush3.msra.mxu1 %v116_v17 }
  0x1e   :  { %281 = vmatprep.subr.mxu1 %v313_v1 }
  0x1f   :  { %282 = vmatpush3.msra.mxu1 %v115_v18 }
  0x20   :  { %283 = vmatprep.subr.mxu1 %v313_v1 }
  0x21   :  { %284 = vmatpush3.msra.mxu1 %v114_v19 }
  0xc5   :  { %v105_v21 = vpop.f32.mrf.mxu0 }
  0xc6   :  { %v106_v23 = vadd.f32 %v223_v20, %v105_v21 }
  0xc7   :  { %v252_v24 = vpop.f32.mrf.mxu0 }
  0xc8   :  { %v112_v25 = vmul.f32 %v111_v22, %v106_v23  ;;  %vm110_vm2 = vcmp.gt.f32.partialorder %v106_v23, 0.0 }
  0xca   :  { %v113_v26 = vsel %vm110_vm2, %v106_v23, %v112_v25 }
  0xcb   :  { %286 = vmatmul.mubr.f32.vlgmr.msra.gmra.mxu1 %v113_v26 }
 0x18b   :  { %v203_v28 = vpop.f32.mrf.mxu1 }
 0x18c   :  { %v204_v29 = vadd.f32 %v225_v27, %v203_v28 }
 0x18d   :  { %v287_v30 = vpop.f32.mrf.mxu1 }
 0x18e   :  { %208 = vst.msk [vmem:[#allocation3] sm:$0xff] %vm207_vm3, %v204_v29 }
 0x18f   :  { %302 = shalt.err (!%p299_p4)
}
 0x190   :  { %218 = dma.vmem_to_hbm [thread:$0]  %s216_s13, 128, %s428_s6, [#allocation4]  }
 0x191   :  { %311 = dma.done.wait [#allocation4], 128  }
 0x192   :  { %312 = vsyncadd [#allocation4], 4294967168 }
 0x193   :  { %222 = vsyncpa [#allocation4], 1 }

</bundles_post_ra>
